<compile_context>
chip_gen: v7x
topology: tpu7x:2x2x1
jax: 0.10.0
libtpu: 0.0.40
codegen_flags: <defaults>
</compile_context>

<pallas_src>
import collections
import functools

import jax
import jax.numpy as jnp
from jax.experimental import pallas as pl
from jax.experimental.pallas import tpu as pltpu


# ------------------------------------------------------------------------------ helpers

def _round_up(x, m):
    return (x + m - 1) // m * m


def _pick_b_pack(n, cap=4):
    """Largest divisor of n that is <= cap (images packed per grid step)."""
    b = 1
    for d in range(1, min(n, cap) + 1):
        if n % d == 0:
            b = d
    return b


def _detect_roll_convention():
    """Probe pltpu.roll's shift direction once; raise if neither convention matches."""
    def kernel(x_ref, o_ref):
        o_ref[...] = pltpu.roll(x_ref[...], shift=1, axis=1)

    x = jnp.tile(jnp.arange(128, dtype=jnp.float32)[None, :], (8, 1))
    y = pl.pallas_call(kernel, out_shape=jax.ShapeDtypeStruct((8, 128), jnp.float32))(x)
    if bool(jnp.all(y == jnp.roll(x, 1, axis=1))):
        return True
    if bool(jnp.all(y == jnp.roll(x, -1, axis=1))):
        return False
    raise RuntimeError("pltpu.roll convention probe failed")


def _conv_tap_masks(h, w, lanes):
    """(9, lanes) {0,1} masks for SAME/zero-padded 3x3 taps; tap t = kh*3+kw (per image)."""
    p = jnp.arange(lanes)
    row, col = p // w, p % w
    rows = []
    for kh in range(3):
        for kw in range(3):
            dh, dw = kh - 1, kw - 1
            ok = ((p < h * w)
                  & (row + dh >= 0) & (row + dh < h)
                  & (col + dw >= 0) & (col + dw < w))
            rows.append(ok)
    return jnp.stack(rows).astype(jnp.float32)


def _pool0_select(h, w, lanes_out):
    """(h*w, lanes_out) 0/1: column q = ho*pw+wo picks flat anchor (3ho)*w + 3wo."""
    ph, pw = h // 3, w // 3
    p = jnp.arange(h * w)
    q = jnp.arange(lanes_out)
    target = (3 * (q // pw)) * w + 3 * (q % pw)
    valid = q < ph * pw
    return ((p[:, None] == target[None, :]) & valid[None, :]).astype(jnp.float32)


def _block_diag(m, b):
    if b == 1:
        return m
    r, c = m.shape
    out = jnp.zeros((b * r, b * c), m.dtype)
    for i in range(b):
        out = out.at[i * r:(i + 1) * r, i * c:(i + 1) * c].set(m)
    return out


# ----------------------------------------------------------------- constant preparation

Geom = collections.namedtuple(
    "Geom", ["b_pack", "cin_pad0", "layers", "shift_col",
             "sel1_r0", "g_r0", "wlin_r0", "sel0_r0", "cout4", "num_classes"])

# Tail-slab header layout (rows):
#   0..8   : 10x10 conv tap masks (per-image, tiled over the packed images)
#   9      : validity row (1 for lanes < 100 within each image, else 0)
#   10     : linear bias row (bias in lanes [0, NC) of each image block)
#   11..15 : zero padding (header = 16 rows, sublane aligned)
_HDR_ROWS = 16
_VALID_ROW = 9
_BIAS_ROW = 10


def prepare_constants(params, b_pack, num_classes, eps=1e-5):
    """Fold BN into conv weights and build the 3 constant slabs (done once, outside jit)."""
    couts = [params[f"conv{i}_w"].shape[0] for i in range(5)]
    cins = [params[f"conv{i}_w"].shape[1] for i in range(5)]
    cin_pads = [_round_up(c, 8) for c in cins]
    ks = [9 * cp for cp in cin_pads]

    row_offs, r = [], 0
    for co in couts:
        row_offs.append(r)
        r += _round_up(co, 8)
    total_rows = r
    shift_col = max(ks)                                  # bias column index in wslab
    w_lanes = _round_up(shift_col + 1, 128)

    # --- weight slab: scale-folded conv weights + BN/conv-bias shift column -----------
    wslab = jnp.zeros((total_rows, w_lanes), jnp.float32)
    for i in range(5):
        w = params[f"conv{i}_w"]                         # (cout, cin, 3, 3), OIHW
        cout, cin = couts[i], cins[i]
        wt = jnp.transpose(w, (0, 2, 3, 1))              # (cout, kh, kw, cin)
        wt = jnp.pad(wt, ((0, 0), (0, 0), (0, 0), (0, cin_pads[i] - cin)))
        w_mat = wt.reshape(cout, ks[i])                  # col = (kh*3+kw)*cin_pad + ci
        scale = params[f"bn{i}_gamma"] / jnp.sqrt(params[f"bn{i}_var"] + eps)
        w_mat = w_mat * scale[:, None]                   # BN scale folded into weights
        shift = (params[f"conv{i}_b"] - params[f"bn{i}_mean"]) * scale + params[f"bn{i}_beta"]
        wslab = wslab.at[row_offs[i]:row_offs[i] + cout, 0:ks[i]].set(w_mat)
        wslab = wslab.at[row_offs[i]:row_offs[i] + cout, shift_col].set(shift)

    # --- 32x32 tap masks, tiled per packed image ---------------------------------------
    masks32 = jnp.tile(_conv_tap_masks(32, 32, 1024), (1, b_pack))      # (9, b*1024)

    # --- tail slab ----------------------------------------------------------------------
    nc = num_classes
    cout4 = couts[4]
    assert 9 * nc <= 128, "lane-dense linear tail assumes 9*num_classes <= 128"
    l1 = b_pack * 128

    masks10 = jnp.tile(_conv_tap_masks(10, 10, 128), (1, b_pack))       # (9, l1)
    valid10 = jnp.tile((jnp.arange(128) < 100).astype(jnp.float32)[None, :], (1, b_pack))
    bias_img = jnp.zeros((1, 128), jnp.float32).at[0, :nc].set(params["linear_b"])
    bias_row = jnp.tile(bias_img, (1, b_pack))
    header = jnp.concatenate(
        [masks10, valid10, bias_row, jnp.zeros((_HDR_ROWS - 11, l1), jnp.float32)], axis=0)

    # sel1: broadcast each pool1 anchor into its 9*NC-wide slot (per image, block-diag).
    p = jnp.arange(128)
    q = jnp.arange(128)
    s_of_q = q // nc
    anchor_of_q = 30 * (s_of_q // 3) + 3 * (s_of_q % 3)
    sel1_img = ((p[:, None] == anchor_of_q[None, :]) & (q[None, :] < 9 * nc)).astype(jnp.float32)
    # G: gather lane s*NC+k -> lane k (class sum over the 9 pooled cells).
    g_img = ((p[:, None] < 9 * nc) & (q[None, :] == (p[:, None] % nc))).astype(jnp.float32)
    sel1_bd = _block_diag(sel1_img, b_pack)              # (l1, l1)
    g_bd = _block_diag(g_img, b_pack)                    # (l1, l1)

    # Pre-permuted linear weights: wlin[c, s*NC + k] = W_lin[k, c*9 + s]  (NCHW flatten).
    wl = params["linear_w"].reshape(nc, cout4, 9)
    wl = jnp.transpose(wl, (1, 2, 0)).reshape(cout4, 9 * nc)
    wlin_img = jnp.pad(wl, ((0, 0), (0, 128 - 9 * nc)))
    wlin = jnp.tile(wlin_img, (1, b_pack))
    wlin_rows = _round_up(cout4, 8)
    wlin_pad = jnp.pad(wlin, ((0, wlin_rows - cout4), (0, 0)))

    # pool0 selection (shared across images, applied per image with aligned lane slices).
    sel0 = jnp.pad(_pool0_select(32, 32, 128), ((0, 0), (0, l1 - 128)))  # (1024, l1)

    sel1_r0 = _HDR_ROWS
    g_r0 = sel1_r0 + l1
    wlin_r0 = g_r0 + l1
    sel0_r0 = wlin_r0 + wlin_rows
    tail = jnp.concatenate([header, sel1_bd, g_bd, wlin_pad, sel0], axis=0)

    geom = Geom(b_pack=b_pack, cin_pad0=cin_pads[0],
                layers=tuple((row_offs[i], couts[i], cin_pads[i], ks[i]) for i in range(5)),
                shift_col=shift_col, sel1_r0=sel1_r0, g_r0=g_r0, wlin_r0=wlin_r0,
                sel0_r0=sel0_r0, cout4=cout4, num_classes=num_classes)
    return (wslab, masks32, tail), geom


# ------------------------------------------------------------------------------- kernel

def _fused_kernel(x_ref, w_ref, m32_ref, tail_ref, o_ref, *,
                  roll_matches_jnp, b_pack, layers, shift_col,
                  sel1_r0, g_r0, wlin_r0, sel0_r0, cout4):
    l0 = b_pack * 1024
    l1 = b_pack * 128

    def lshift(arr, off, lanes):
        """out[:, p] = arr[:, p + off]; wrapped lanes are masked / never consumed."""
        if off % lanes == 0:
            return arr
        amt = ((-off) % lanes) if roll_matches_jnp else (off % lanes)
        return pltpu.roll(arr, shift=amt, axis=1)

    def conv_bn_relu(a, li, mask_row, wdim, lanes):
        # Implicit im2col in VMEM: 9 lane-shifted, zero-padding-masked copies stacked on
        # the sublane axis -> one MXU GEMM (K = 9*Cin) with a lane-dense (Cout, lanes)
        # output.  BN scale is pre-folded into the weights, so the epilogue is +shift,ReLU.
        r0, cout, cin_p, k = layers[li]
        taps = []
        for kh in range(3):
            for kw in range(3):
                t = kh * 3 + kw
                off = (kh - 1) * wdim + (kw - 1)
                tap = lshift(a, off, lanes)
                if t != 4:
                    # Center tap needs no mask: on 32x32 it is all-ones; on 10x10 the
                    # padded lanes (>=100) of the input are already zero (pool0 select).
                    tap = tap * mask_row(t)
                taps.append(tap)
        patches = jnp.concatenate(taps, axis=0)                  # (9*cin_p, lanes)
        w = w_ref[r0:r0 + cout, 0:k]
        shift = w_ref[r0:r0 + cout, shift_col:shift_col + 1]     # (cout, 1)
        acc = jnp.dot(w, patches, preferred_element_type=jnp.float32)
        return jnp.maximum(acc + shift, 0.0)

    def pool3_max(a, wdim, lanes):
        # Separable 3x3 window max (4 rolls instead of 8); only the stride-3 anchor
        # lanes are consumed downstream, so out-of-window / wrapped lanes never matter.
        m = jnp.maximum(a, jnp.maximum(lshift(a, 1, lanes), lshift(a, 2, lanes)))
        m = jnp.maximum(m, jnp.maximum(lshift(m, wdim, lanes), lshift(m, 2 * wdim, lanes)))
        return m

    mask32 = lambda t: m32_ref[t:t + 1, :]
    mask10 = lambda t: tail_ref[t:t + 1, :]

    a = x_ref[0]                                     # (cin_pad0, b_pack*1024)
    a = conv_bn_relu(a, 0, mask32, 32, l0)           # (1w, l0)
    a = conv_bn_relu(a, 1, mask32, 32, l0)           # (2w, l0)
    a = conv_bn_relu(a, 2, mask32, 32, l0)           # (2w, l0)
    a = conv_bn_relu(a, 3, mask32, 32, l0)           # (4w, l0)

    # pool0: 32x32 -> 10x10; window max via rolls, then a 0/1 selection matmul gathers
    # the 100 anchor lanes per image (padded to 128 lanes, rest exactly 0).
    m0 = pool3_max(a, 32, l0)
    sel0 = tail_ref[sel0_r0:sel0_r0 + 1024, 0:128]
    pooled = [jnp.dot(m0[:, b * 1024:(b + 1) * 1024], sel0,
                      preferred_element_type=jnp.float32) for b in range(b_pack)]
    a = pooled[0] if b_pack == 1 else jnp.concatenate(pooled, axis=1)   # (4w, l1)

    a = conv_bn_relu(a, 4, mask10, 10, l1)           # (4w, l1)
    a = a * tail_ref[_VALID_ROW:_VALID_ROW + 1, :]   # zero junk lanes >= 100 per image

    # pool1 (10x10 -> 3x3) fused with flatten + linear, all lane-dense MXU work:
    #   E[c, s*NC+k]   = m1[c, anchor_s]                       (selection matmul)
    #   prod           = E * wlin   with wlin[c, s*NC+k] = W_lin[k, c*9+s]
    #   logits[k]      = sum_c (prod @ G)[c, k] + b[k]         (G gathers s*NC+k -> k)
    m1 = pool3_max(a, 10, l1)                                        # (4w, l1)
    sel1 = tail_ref[sel1_r0:sel1_r0 + l1, :]
    gmat = tail_ref[g_r0:g_r0 + l1, :]
    wlin = tail_ref[wlin_r0:wlin_r0 + cout4, :]
    bias = tail_ref[_BIAS_ROW:_BIAS_ROW + 1, :]
    e = jnp.dot(m1, sel1, preferred_element_type=jnp.float32)        # (4w, l1)
    logits = jnp.sum(jnp.dot(e * wlin, gmat, preferred_element_type=jnp.float32),
                     axis=0, keepdims=True) + bias                   # (1, l1), lane-dense
    o_ref[...] = logits[None]                                        # (1, 1, l1)


# -------------------------------------------------------------------------------- model

def make_forward(geom, roll_matches_jnp):
    """Builds the jittable ConvNetBN forward (input NCHW, PyTorch convention)."""
    b_pack = geom.b_pack
    cin_pad0 = geom.cin_pad0
    l0 = b_pack * 1024
    l1 = b_pack * 128

    kernel = functools.partial(
        _fused_kernel, roll_matches_jnp=roll_matches_jnp, b_pack=b_pack,
        layers=geom.layers, shift_col=geom.shift_col, sel1_r0=geom.sel1_r0,
        g_r0=geom.g_r0, wlin_r0=geom.wlin_r0, sel0_r0=geom.sel0_r0, cout4=geom.cout4)

    def forward(consts, x_nchw):
        wslab, masks32, tail = consts
        n, cin, h, w = x_nchw.shape
        if (h, w) != (32, 32):
            raise ValueError("this ConvNetBN fusion is specialized to 32x32 inputs")
        if n % b_pack != 0:
            raise ValueError("batch must be divisible by the packing factor")
        n_steps = n // b_pack

        # NCHW -> (steps, cin_pad, b_pack*1024): channels on sublanes, (image, pixel) on lanes.
        x = x_nchw.astype(jnp.float32).reshape(n, cin, h * w)
        x = jnp.pad(x, ((0, 0), (0, cin_pad0 - cin), (0, 0)))
        x = x.reshape(n_steps, b_pack, cin_pad0, h * w).transpose(0, 2, 1, 3)
        x = x.reshape(n_steps, cin_pad0, l0)

        out = pl.pallas_call(
            kernel,
            out_shape=jax.ShapeDtypeStruct((n_steps, 1, l1), jnp.float32),
            grid=(n_steps,),
            in_specs=[pl.BlockSpec((1, cin_pad0, l0), lambda i: (i, 0, 0)),
                      pl.BlockSpec(wslab.shape, lambda i: (0, 0)),
                      pl.BlockSpec(masks32.shape, lambda i: (0, 0)),
                      pl.BlockSpec(tail.shape, lambda i: (0, 0))],
            out_specs=pl.BlockSpec((1, 1, l1), lambda i: (i, 0, 0)),
            compiler_params=pltpu.CompilerParams(
                dimension_semantics=("parallel",),
                vmem_limit_bytes=32 * 1024 * 1024),
        )(x, wslab, masks32, tail)

        # lane block b of step g holds image g*b_pack + b; classes live in lanes [0, NC).
        return out.reshape(n_steps * b_pack, 128)[:, :geom.num_classes]

    return forward


# ------------------------------------------------------------------------ params / ref

def init_params(key, width=8, num_classes=10, in_channels=3):
    """Deterministic synthetic parameters in PyTorch layouts (conv: OIHW, linear: (out, in))."""
    conv_specs = [
        (in_channels, 1 * width),
        (1 * width, 2 * width),
        (2 * width, 2 * width),
        (2 * width, 4 * width),
        (4 * width, 4 * width),
    ]
    params = {}
    for i, (cin, cout) in enumerate(conv_specs):
        key, k1, k2, k3, k4, k5, k6 = jax.random.split(key, 7)
        fan_in = cin * 9
        params[f"conv{i}_w"] = jax.random.normal(k1, (cout, cin, 3, 3), jnp.float32) / jnp.sqrt(fan_in)
        params[f"conv{i}_b"] = 0.1 * jax.random.normal(k2, (cout,), jnp.float32)
        params[f"bn{i}_gamma"] = 1.0 + 0.1 * jax.random.normal(k3, (cout,), jnp.float32)
        params[f"bn{i}_beta"] = 0.1 * jax.random.normal(k4, (cout,), jnp.float32)
        params[f"bn{i}_mean"] = 0.1 * jax.random.normal(k5, (cout,), jnp.float32)
        params[f"bn{i}_var"] = 1.0 + 0.1 * jnp.abs(jax.random.normal(k6, (cout,), jnp.float32))
    key, k1, k2 = jax.random.split(key, 3)
    params["linear_w"] = jax.random.normal(k1, (num_classes, 36 * width), jnp.float32) / jnp.sqrt(36 * width)
    params["linear_b"] = 0.1 * jax.random.normal(k2, (num_classes,), jnp.float32)
    return params


def reference_forward(params, x_nchw):
    """Pure-JAX (XLA) reference of the PyTorch module in eval mode."""
    eps = 1e-5
    x = x_nchw.astype(jnp.float32)

    def cbr(x, i):
        y = jax.lax.conv_general_dilated(
            x, params[f"conv{i}_w"], (1, 1), ((1, 1), (1, 1)),
            dimension_numbers=("NCHW", "OIHW", "NCHW"),
            precision=jax.lax.Precision.HIGHEST)
        y = y + params[f"conv{i}_b"][None, :, None, None]
        scale = params[f"bn{i}_gamma"] / jnp.sqrt(params[f"bn{i}_var"] + eps)
        y = ((y - params[f"bn{i}_mean"][None, :, None, None]) * scale[None, :, None, None]
             + params[f"bn{i}_beta"][None, :, None, None])
        return jnp.maximum(y, 0.0)

    def pool(x):
        return jax.lax.reduce_window(x, -jnp.inf, jax.lax.max,
                                     (1, 1, 3, 3), (1, 1, 3, 3), "VALID")

    for i in range(4):
        x = cbr(x, i)
    x = pool(x)
    x = cbr(x, 4)
    x = pool(x)
    x = x.reshape(x.shape[0], -1)
    return (jnp.dot(x, params["linear_w"].T, precision=jax.lax.Precision.HIGHEST)
            + params["linear_b"])


# --------------------------------------------------------------------------------- main

if __name__ == "__main__":
    WIDTH = 8           # linear in_features = 36 * WIDTH = 288
    NUM_CLASSES = 10
    IN_CHANNELS = 3
    BATCH, SPATIAL = 2, 32   # 32x32 -> 3x3 after the two MaxPool2d(3), matching 36*width

    key = jax.random.PRNGKey(0)
    key_x, key_p = jax.random.split(key)
    x = jax.random.normal(key_x, (BATCH, IN_CHANNELS, SPATIAL, SPATIAL), jnp.float32)  # NCHW
    params = init_params(key_p, width=WIDTH, num_classes=NUM_CLASSES, in_channels=IN_CHANNELS)

    b_pack = _pick_b_pack(BATCH)                 # 2 -> both images in one grid step
    roll_matches_jnp = _detect_roll_convention()
    consts, geom = prepare_constants(params, b_pack, NUM_CLASSES)   # done once, outside jit

    fwd = jax.jit(make_forward(geom, roll_matches_jnp))
    logits = fwd(consts, x)
    jax.block_until_ready(logits)

    assert logits.shape == (BATCH, NUM_CLASSES), logits.shape
    assert bool(jnp.all(jnp.isfinite(logits)))

    # Numerical check against the pure-JAX reference (generous tolerance for MXU rounding).
    ref = jax.jit(reference_forward)(params, x)
    err = float(jnp.max(jnp.abs(logits - ref)))
    scale = max(1.0, float(jnp.max(jnp.abs(ref))))
    assert err <= 3e-2 * scale, f"kernel/reference mismatch: max abs err {err}"

    print("KERNEL_OK")
</pallas_src>

<mosaic_0001>
module attributes {stable_mosaic.version = 11 : i64} {
  func.func @kernel(%arg0: memref<8x128xf32, #tpu.memory_space<vmem>>, %arg1: memref<8x128xf32, #tpu.memory_space<vmem>>) attributes {dimension_semantics = [], scalar_prefetch = 0 : i64, scratch_operands = 0 : i64, tpu.core_type = #tpu.core_type<tc>} {
    %c0 = arith.constant 0 : index
    %c0_0 = arith.constant 0 : index
    %0 = vector.load %arg0[%c0, %c0_0] : memref<8x128xf32, #tpu.memory_space<vmem>>, vector<8x128xf32>
    %c1_i32 = arith.constant 1 : i32
    %1 = tpu.dynamic_rotate %0 by %c1_i32 dim 1 : vector<8x128xf32>, i32 -> vector<8x128xf32>
    %c0_1 = arith.constant 0 : index
    %c0_2 = arith.constant 0 : index
    %2 = vector.load %arg1[%c0_1, %c0_2] : memref<8x128xf32, #tpu.memory_space<vmem>>, vector<8x128xf32>
    tpu.vector_store %arg1[%c0_1, %c0_2], %1 {strides = array<i32>} : memref<8x128xf32, #tpu.memory_space<vmem>>, vector<8x128xf32>,
    return
  }
}

</mosaic_0001>

<bundles_post_ra>
// kernel: tpu_custom_call.1
= control target key start
LH: loop header
LB: loop body
LE: loop exit
PB: predicated region body
PF: predicated region fallthrough
CT: control target
= control target key end

     0   :  { %6 = vsyncpa [#allocation3], 0  ;;  %s128_s0 = inlined_call_operand.hbm [shape: f32[8,128], index: 0, kind: input, shape index: {}]   ;;  %s129_s1 = inlined_call_operand.hbm [shape: f32[8,128], index: 1, kind: output, shape index: {}]  }
   0x1   :  { %7 = vsyncpa [#allocation4], 0  ;;  %s91_s6 = smov [#allocation2]   ;;  %s43_s10 = scalar_lea.hbm %s128_s0, 128 }
   0x2   :  { %s14_s7 = sshll.u32 %s91_s6, 4  ;;  %p44_p0 = scmp.ne.s32.totalorder %s128_s0, %s43_s10  ;;  %s15_s7 = int_to_ptr.vmem [resolvable:$true] %s14_s7 }
   0x3   :  { %p47_p1 = scmp.lt.u32.totalorder %s43_s10, %s128_s0 }
   0x5   :  { %p49_p2 = pnand %p47_p1, %p44_p0 }
   0x7   :  { %52 = shalt.err (!%p49_p2)
}
   0x8   :  { %s53_s15 = scalar_lea.vmem %s15_s7, 128  ;;  %p58_p4 = scmp.lt.s32.totalorder %s15_s7, %s15_s7 }
   0x9   :  { %p54_p3 = scmp.ne.s32.totalorder %s15_s7, %s53_s15  ;;  %p59_p5 = scmp.lt.s32.totalorder %s53_s15, %s53_s15 }
   0xb   :  { %p60_p6 = por %p59_p5, %p58_p4 }
   0xd   :  { %p61_p7 = pnand %p60_p6, %p54_p3 }
   0xf   :  { %64 = shalt.err (!%p61_p7)
}
  0x10   :  { %17 = dma.hbm_to_vmem [thread:$0]  %s128_s0, 128, %s15_s7, [#allocation3]  }
  0x11   :  { %87 = dma.done.wait [#allocation3], 128  }
  0x12   :  { %88 = vsyncadd [#allocation3], 4294967168  ;;  %v21_v0 = vld [vmem:[#allocation2] sm:$0xff]  ;;  %s92_s18 = smov 1   ;;  %s93_s19 = smov [#allocation5]  }
  0x13   :  { %22 = vrot.lane.b32.xlu0 %v21_v0, %s92_s18  ;;  %s31_s20 = sshll.u32 %s93_s19, 4  ;;  %s32_s20 = int_to_ptr.vmem [resolvable:$true] %s31_s20 }
  0x14   :  { %s65_s21 = scalar_lea.vmem %s32_s20, 128  ;;  %p70_p9 = scmp.lt.s32.totalorder %s32_s20, %s32_s20 }
  0x15   :  { %p66_p8 = scmp.ne.s32.totalorder %s32_s20, %s65_s21  ;;  %p71_p10 = scmp.lt.s32.totalorder %s65_s21, %s65_s21 }
  0x17   :  { %p72_p11 = por %p71_p10, %p70_p9 }
  0x19   :  { %p73_p12 = pnand %p72_p11, %p66_p8 }
  0x85   :  { %v23_v1 = vpop.permute.xlu0 %22 }
  0x86   :  { %24 = vst [vmem:[#allocation5] sm:$0xff] %v23_v1 }
  0x87   :  { %76 = shalt.err (!%p73_p12)
}
  0x88   :  { %s77_s0 = scalar_lea.hbm %s129_s1, 128 }
  0x89   :  { %p78_p13 = scmp.ne.s32.totalorder %s129_s1, %s77_s0  ;;  %p81_p0 = scmp.lt.u32.totalorder %s77_s0, %s129_s1 }
  0x8b   :  { %p83_p1 = pnand %p81_p0, %p78_p13 }
  0x8d   :  { %86 = shalt.err (!%p83_p1)
}
  0x8e   :  { %34 = dma.vmem_to_hbm [thread:$0]  %s32_s20, 128, %s129_s1, [#allocation4]  }
  0x8f   :  { %89 = dma.done.wait [#allocation4], 128  }
  0x90   :  { %90 = vsyncadd [#allocation4], 4294967168 }
  0x91   :  { %38 = vsyncpa [#allocation3], 1 }
  0x92   :  { %39 = vsyncpa [#allocation4], 1 }

</bundles_post_ra>
